<compile_context>
chip_gen: v7x
topology: tpu7x:2x2x1
jax: 0.10.0
libtpu: 0.0.40
codegen_flags: <defaults>
</compile_context>

<pallas_src>
import functools

import jax
import jax.numpy as jnp
from jax.experimental import pallas as pl
from jax.experimental.pallas import tpu as pltpu

STATE_DIM = 16
ACTION_DIM = 8
HIDDEN1 = 512
HIDDEN2 = 256
MAX_ACTION = 2.0

OUT_PAD = 128   # padded output lane width (lane-dense, unmasked stores)
TB_MAX = 512    # batch-tile cap (multiple of 256 -> full MXU M on v6e/v7x)


def _round_up(x, m):
    return (x + m - 1) // m * m


def _actor_kernel(x_ref, w1_ref, b1_ref, w2_ref, b2_ref, w3_ref, b3_ref, o_ref):
    bf16 = jnp.bfloat16
    x = x_ref[...]                                               # (TB, 16) bf16
    # l1 + relu  (K=16 contraction; Mosaic pads the MXU pass internally)
    h1 = jnp.dot(x, w1_ref[...], preferred_element_type=jnp.float32) + b1_ref[...]
    h1 = jnp.maximum(h1, 0.0)
    # l2 + relu
    h2 = jnp.dot(h1.astype(bf16), w2_ref[...],
                 preferred_element_type=jnp.float32) + b2_ref[...]
    h2 = jnp.maximum(h2, 0.0)
    # l3 + tanh, scaled by max_action (output lanes padded to 128; pads are 0)
    a = jnp.dot(h2.astype(bf16), w3_ref[...],
                preferred_element_type=jnp.float32) + b3_ref[...]
    o_ref[...] = (jnp.tanh(a) * MAX_ACTION).astype(o_ref.dtype)  # (TB, 128)


def prepare_params(params):
    """One-time (per parameter update) cast/pad of weights for the kernel.

    Hoisted out of actor_forward so the per-call path only moves the state.
    Weights are bf16 (MXU rate, half the HBM weight traffic); biases stay f32.
    w3/b3 are zero-padded on the output side to 128 lanes so the final store
    is lane-dense; the zero columns produce tanh(0)*max_action = 0 and are
    sliced away in the wrapper.
    """
    f32, bf16 = jnp.float32, jnp.bfloat16
    w3 = jnp.zeros((HIDDEN2, OUT_PAD), bf16).at[:, :ACTION_DIM].set(
        params["w3"].astype(bf16))
    b3 = jnp.zeros((1, OUT_PAD), f32).at[:, :ACTION_DIM].set(
        params["b3"].astype(f32))
    return {
        "w1": params["w1"].astype(bf16),          # (16, 512)
        "b1": params["b1"].astype(f32),           # (1, 512)
        "w2": params["w2"].astype(bf16),          # (512, 256)
        "b2": params["b2"].astype(f32),           # (1, 256)
        "w3": w3,                                 # (256, 128)
        "b3": b3,                                 # (1, 128)
    }


def actor_forward(state, prep, *, tb_max=TB_MAX):
    """state: (B, STATE_DIM). prep: output of prepare_params (resident weights)."""
    B = state.shape[0]
    # Minimal number of tiles under the cap, then the smallest 16-aligned tile
    # that covers B with that tile count (minimizes zero-row padding waste).
    n_tiles = pl.cdiv(B, tb_max)
    TB = _round_up(pl.cdiv(B, n_tiles), 16)
    B_pad = n_tiles * TB

    # Per-sample HBM traffic: 32 B read (bf16 x 16 lanes), no 16->128 host pad.
    x = state.astype(jnp.bfloat16)
    if B_pad != B:
        x = jnp.zeros((B_pad, STATE_DIM), jnp.bfloat16).at[:B, :].set(x)

    w1, b1 = prep["w1"], prep["b1"]
    w2, b2 = prep["w2"], prep["b2"]
    w3, b3 = prep["w3"], prep["b3"]

    # Constant index_maps -> blocks are identical every grid step, so the
    # weights/biases are DMA'd once and stay resident in VMEM.
    resident = lambda shape: pl.BlockSpec(shape, lambda i: (0, 0))

    weight_bytes = ((w1.size + w2.size + w3.size) * 2
                    + (b1.size + b2.size + b3.size) * 4)
    cost = pl.CostEstimate(
        flops=2 * B_pad * (STATE_DIM * HIDDEN1 + HIDDEN1 * HIDDEN2
                           + HIDDEN2 * OUT_PAD),
        transcendentals=B_pad * OUT_PAD,
        bytes_accessed=weight_bytes + B_pad * (STATE_DIM * 2 + OUT_PAD * 4),
    )

    out = pl.pallas_call(
        _actor_kernel,
        out_shape=jax.ShapeDtypeStruct((B_pad, OUT_PAD), jnp.float32),
        grid=(n_tiles,),
        in_specs=[
            # (TB, 16): last block dim equals the full array dim -> legal.
            pl.BlockSpec((TB, STATE_DIM), lambda i: (i, 0)),
            resident(w1.shape), resident(b1.shape),
            resident(w2.shape), resident(b2.shape),
            resident(w3.shape), resident(b3.shape),
        ],
        out_specs=pl.BlockSpec((TB, OUT_PAD), lambda i: (i, 0)),
        compiler_params=pltpu.CompilerParams(
            dimension_semantics=("parallel",),   # megacore split on v7x
            vmem_limit_bytes=32 << 20,
        ),
        cost_estimate=cost,
    )(x, w1, b1, w2, b2, w3, b3)

    return out[:B, :ACTION_DIM]


def init_params(key):
    """Deterministic parameter init (PyTorch Linear shapes, stored transposed)."""
    ks = jax.random.split(key, 6)

    def linear(kw, kb, fan_in, fan_out):
        bound = 1.0 / jnp.sqrt(fan_in)
        # torch.nn.Linear weight is (out, in); we store its transpose (in, out).
        w = jax.random.uniform(kw, (fan_in, fan_out), jnp.float32, -bound, bound)
        b = jax.random.uniform(kb, (1, fan_out), jnp.float32, -bound, bound)
        return w, b

    w1, b1 = linear(ks[0], ks[1], STATE_DIM, HIDDEN1)
    w2, b2 = linear(ks[2], ks[3], HIDDEN1, HIDDEN2)
    w3, b3 = linear(ks[4], ks[5], HIDDEN2, ACTION_DIM)
    return {"w1": w1, "b1": b1, "w2": w2, "b2": b2, "w3": w3, "b3": b3}


def actor_reference_f32(state, p):
    h1 = jnp.maximum(state @ p["w1"] + p["b1"], 0.0)
    h2 = jnp.maximum(h1 @ p["w2"] + p["b2"], 0.0)
    return jnp.tanh(h2 @ p["w3"] + p["b3"]) * MAX_ACTION


def actor_reference_bf16(state, p):
    """Mimics the kernel's numerics (bf16 dot inputs, f32 accumulation)."""
    bf = jnp.bfloat16
    dot = functools.partial(jnp.dot, preferred_element_type=jnp.float32)
    h1 = jnp.maximum(dot(state.astype(bf), p["w1"].astype(bf)) + p["b1"], 0.0)
    h2 = jnp.maximum(dot(h1.astype(bf), p["w2"].astype(bf)) + p["b2"], 0.0)
    a = dot(h2.astype(bf), p["w3"].astype(bf)) + p["b3"]
    return jnp.tanh(a) * MAX_ACTION


if __name__ == "__main__":
    key = jax.random.PRNGKey(0)
    k_state, k_params, k_big = jax.random.split(key, 3)
    params = init_params(k_params)
    prep = prepare_params(params)          # one-time cast/pad, off the call path

    # Small batch (module-typical inference shape).
    state = jax.random.normal(k_state, (2, STATE_DIM), jnp.float32)
    out = jax.block_until_ready(actor_forward(state, prep))
    assert out.shape == (2, ACTION_DIM)
    # bf16 weights/activations are an intentional precision tradeoff: tight vs
    # a bf16-mimicking reference, loose vs the f32 PyTorch reference.
    assert jnp.allclose(out, actor_reference_bf16(state, params), atol=1e-4, rtol=1e-4)
    assert jnp.allclose(out, actor_reference_f32(state, params), atol=5e-2, rtol=5e-2)

    # Batch that is not a multiple of the tile size (exercises grid + padding).
    state_big = jax.random.normal(k_big, (260, STATE_DIM), jnp.float32)
    out_big = jax.block_until_ready(actor_forward(state_big, prep))
    assert out_big.shape == (260, ACTION_DIM)
    assert jnp.allclose(out_big, actor_reference_bf16(state_big, params),
                        atol=1e-4, rtol=1e-4)

    print("KERNEL_OK")
</pallas_src>

<mosaic_0001>
module attributes {stable_mosaic.version = 11 : i64} {
  func.func @_actor_kernel(%arg0: i32, %arg1: memref<16x16xbf16, #tpu.memory_space<vmem>>, %arg2: memref<16x512xbf16, #tpu.memory_space<vmem>>, %arg3: memref<1x512xf32, #tpu.memory_space<vmem>>, %arg4: memref<512x256xbf16, #tpu.memory_space<vmem>>, %arg5: memref<1x256xf32, #tpu.memory_space<vmem>>, %arg6: memref<256x128xbf16, #tpu.memory_space<vmem>>, %arg7: memref<1x128xf32, #tpu.memory_space<vmem>>, %arg8: memref<16x128xf32, #tpu.memory_space<vmem>>) attributes {dimension_semantics = [#tpu.dimension_semantics<parallel>], iteration_bounds = array<i64: 1>, scalar_prefetch = 0 : i64, scratch_operands = 0 : i64, tpu.core_type = #tpu.core_type<tc>, window_params = [{transform_indices = @transform_0, window_bounds = array<i64: 16, 16>}, {pipeline_mode = #tpu.pipeline_mode<synchronous>, transform_indices = @transform_1, window_bounds = array<i64: 16, 512>}, {pipeline_mode = #tpu.pipeline_mode<synchronous>, transform_indices = @transform_2, window_bounds = array<i64: 1, 512>}, {pipeline_mode = #tpu.pipeline_mode<synchronous>, transform_indices = @transform_3, window_bounds = array<i64: 512, 256>}, {pipeline_mode = #tpu.pipeline_mode<synchronous>, transform_indices = @transform_4, window_bounds = array<i64: 1, 256>}, {pipeline_mode = #tpu.pipeline_mode<synchronous>, transform_indices = @transform_5, window_bounds = array<i64: 256, 128>}, {pipeline_mode = #tpu.pipeline_mode<synchronous>, transform_indices = @transform_6, window_bounds = array<i64: 1, 128>}, {transform_indices = @transform_7, window_bounds = array<i64: 16, 128>}]} {
    %c0 = arith.constant 0 : index
    %c0_0 = arith.constant 0 : index
    %0 = vector.load %arg1[%c0, %c0_0] : memref<16x16xbf16, #tpu.memory_space<vmem>>, vector<16x16xbf16>
    %c0_1 = arith.constant 0 : index
    %c0_2 = arith.constant 0 : index
    %1 = vector.load %arg2[%c0_1, %c0_2] : memref<16x512xbf16, #tpu.memory_space<vmem>>, vector<16x512xbf16>
    %cst = arith.constant dense<0.000000e+00> : vector<16x512xf32>
    %2 = tpu.matmul %0, %1, %cst {dimension_numbers = #tpu.dot_dimension_numbers<[1], [0], [0], [1], [0, 0, 1, 1], [], []>} : vector<16x16xbf16>, vector<16x512xbf16>, vector<16x512xf32> -> vector<16x512xf32>
    %c0_3 = arith.constant 0 : index
    %c0_4 = arith.constant 0 : index
    %3 = vector.load %arg3[%c0_3, %c0_4] : memref<1x512xf32, #tpu.memory_space<vmem>>, vector<1x512xf32>
    %4 = vector.broadcast %3 : vector<1x512xf32> to vector<16x512xf32>
    %5 = arith.addf %2, %4 : vector<16x512xf32>
    %cst_5 = arith.constant 0.000000e+00 : f32
    %6 = vector.broadcast %cst_5 : f32 to vector<16x512xf32>
    %7 = arith.maximumf %5, %6 : vector<16x512xf32>
    %8 = arith.truncf %7 : vector<16x512xf32> to vector<16x512xbf16>
    %c0_6 = arith.constant 0 : index
    %c0_7 = arith.constant 0 : index
    %9 = vector.load %arg4[%c0_6, %c0_7] : memref<512x256xbf16, #tpu.memory_space<vmem>>, vector<512x256xbf16>
    %cst_8 = arith.constant dense<0.000000e+00> : vector<16x256xf32>
    %10 = tpu.matmul %8, %9, %cst_8 {dimension_numbers = #tpu.dot_dimension_numbers<[1], [0], [0], [1], [0, 0, 1, 1], [], []>} : vector<16x512xbf16>, vector<512x256xbf16>, vector<16x256xf32> -> vector<16x256xf32>
    %c0_9 = arith.constant 0 : index
    %c0_10 = arith.constant 0 : index
    %11 = vector.load %arg5[%c0_9, %c0_10] : memref<1x256xf32, #tpu.memory_space<vmem>>, vector<1x256xf32>
    %12 = vector.broadcast %11 : vector<1x256xf32> to vector<16x256xf32>
    %13 = arith.addf %10, %12 : vector<16x256xf32>
    %cst_11 = arith.constant 0.000000e+00 : f32
    %14 = vector.broadcast %cst_11 : f32 to vector<16x256xf32>
    %15 = arith.maximumf %13, %14 : vector<16x256xf32>
    %16 = arith.truncf %15 : vector<16x256xf32> to vector<16x256xbf16>
    %c0_12 = arith.constant 0 : index
    %c0_13 = arith.constant 0 : index
    %17 = vector.load %arg6[%c0_12, %c0_13] : memref<256x128xbf16, #tpu.memory_space<vmem>>, vector<256x128xbf16>
    %cst_14 = arith.constant dense<0.000000e+00> : vector<16x128xf32>
    %18 = tpu.matmul %16, %17, %cst_14 {dimension_numbers = #tpu.dot_dimension_numbers<[1], [0], [0], [1], [0, 0, 1, 1], [], []>} : vector<16x256xbf16>, vector<256x128xbf16>, vector<16x128xf32> -> vector<16x128xf32>
    %c0_15 = arith.constant 0 : index
    %c0_16 = arith.constant 0 : index
    %19 = vector.load %arg7[%c0_15, %c0_16] : memref<1x128xf32, #tpu.memory_space<vmem>>, vector<1x128xf32>
    %20 = vector.broadcast %19 : vector<1x128xf32> to vector<16x128xf32>
    %21 = arith.addf %18, %20 : vector<16x128xf32>
    %22 = math.tanh %21 : vector<16x128xf32>
    %cst_17 = arith.constant 2.000000e+00 : f32
    %23 = vector.broadcast %cst_17 : f32 to vector<16x128xf32>
    %24 = arith.mulf %22, %23 : vector<16x128xf32>
    %c0_18 = arith.constant 0 : index
    %c0_19 = arith.constant 0 : index
    %25 = vector.load %arg8[%c0_18, %c0_19] : memref<16x128xf32, #tpu.memory_space<vmem>>, vector<16x128xf32>
    tpu.vector_store %arg8[%c0_18, %c0_19], %24 {strides = array<i32>} : memref<16x128xf32, #tpu.memory_space<vmem>>, vector<16x128xf32>,
    return
  }
  func.func @transform_0(%arg0: i32) -> (i32, i32) {
    %c0_i32 = arith.constant 0 : i32
    %c0_i32_0 = arith.constant 0 : i32
    return %arg0, %c0_i32 : i32, i32
  }
  func.func @transform_1(%arg0: i32) -> (i32, i32) {
    %c0_i32 = arith.constant 0 : i32
    %c0_i32_0 = arith.constant 0 : i32
    %c0_i32_1 = arith.constant 0 : i32
    return %c0_i32, %c0_i32_0 : i32, i32
  }
  func.func @transform_2(%arg0: i32) -> (i32, i32) {
    %c0_i32 = arith.constant 0 : i32
    %c0_i32_0 = arith.constant 0 : i32
    %c0_i32_1 = arith.constant 0 : i32
    return %c0_i32, %c0_i32_0 : i32, i32
  }
  func.func @transform_3(%arg0: i32) -> (i32, i32) {
    %c0_i32 = arith.constant 0 : i32
    %c0_i32_0 = arith.constant 0 : i32
    %c0_i32_1 = arith.constant 0 : i32
    return %c0_i32, %c0_i32_0 : i32, i32
  }
  func.func @transform_4(%arg0: i32) -> (i32, i32) {
    %c0_i32 = arith.constant 0 : i32
    %c0_i32_0 = arith.constant 0 : i32
    %c0_i32_1 = arith.constant 0 : i32
    return %c0_i32, %c0_i32_0 : i32, i32
  }
  func.func @transform_5(%arg0: i32) -> (i32, i32) {
    %c0_i32 = arith.constant 0 : i32
    %c0_i32_0 = arith.constant 0 : i32
    %c0_i32_1 = arith.constant 0 : i32
    return %c0_i32, %c0_i32_0 : i32, i32
  }
  func.func @transform_6(%arg0: i32) -> (i32, i32) {
    %c0_i32 = arith.constant 0 : i32
    %c0_i32_0 = arith.constant 0 : i32
    %c0_i32_1 = arith.constant 0 : i32
    return %c0_i32, %c0_i32_0 : i32, i32
  }
  func.func @transform_7(%arg0: i32) -> (i32, i32) {
    %c0_i32 = arith.constant 0 : i32
    %c0_i32_0 = arith.constant 0 : i32
    return %arg0, %c0_i32 : i32, i32
  }
}

</mosaic_0001>

<bundles_post_ra>
// kernel: tpu_custom_call.1
= control target key start
LH: loop header
LB: loop body
LE: loop exit
PB: predicated region body
PF: predicated region fallthrough
CT: control target
= control target key end

     0   :  { %12 = vsyncpa [#allocation3], 0  ;;  %s1447_s0 = inlined_call_operand.hbm [shape: bf16[16,16], index: 0, kind: input, shape index: {}]   ;;  %s1448_s1 = inlined_call_operand.hbm [shape: bf16[16,512], index: 1, kind: input, shape index: {}]   ;;  %s1449_s2 = inlined_call_operand.vmem [shape: f32[1,512], index: 2, kind: input, shape index: {}]   ;;  %s1450_s3 = inlined_call_operand.hbm [shape: bf16[512,256], index: 3, kind: input, shape index: {}]   ;;  %s1451_s4 = inlined_call_operand.vmem [shape: f32[1,256], index: 4, kind: input, shape index: {}]   ;;  %s1452_s5 = inlined_call_operand.hbm [shape: bf16[256,128], index: 5, kind: input, shape index: {}]   ;;  %s1453_s6 = inlined_call_operand.vmem [shape: f32[1,128], index: 6, kind: input, shape index: {}]   ;;  %s1454_s7 = inlined_call_operand.hbm [shape: f32[16,128], index: 7, kind: output, shape index: {}]  }
   0x1   :  { %13 = vsyncpa [#allocation6], 0 }
   0x2   :  { %14 = vsyncpa [#allocation9], 0 }
   0x3   :  { %15 = vsyncpa [#allocation4], 0  ;;  %s1298_s24 = smov [#allocation5]   ;;  %s1180_s28 = scalar_lea.hbm %s1448_s1, 512 }
   0x4   :  { %s33_s25 = sshll.u32 %s1298_s24, 4  ;;  %p1181_p0 = scmp.ne.s32.totalorder %s1448_s1, %s1180_s28  ;;  %s34_s25 = int_to_ptr.vmem [resolvable:$true] %s33_s25 }
   0x5   :  { %p1184_p1 = scmp.lt.u32.totalorder %s1180_s28, %s1448_s1 }
   0x7   :  { %p1186_p2 = pnand %p1184_p1, %p1181_p0 }
   0x9   :  { %1189 = shalt.err (!%p1186_p2)
}
   0xa   :  { %s1190_s10 = scalar_lea.vmem %s34_s25, 512  ;;  %p1195_p4 = scmp.lt.s32.totalorder %s34_s25, %s34_s25 }
   0xb   :  { %p1191_p3 = scmp.ne.s32.totalorder %s34_s25, %s1190_s10  ;;  %p1196_p5 = scmp.lt.s32.totalorder %s1190_s10, %s1190_s10 }
   0xd   :  { %p1197_p6 = por %p1196_p5, %p1195_p4 }
   0xf   :  { %p1198_p7 = pnand %p1197_p6, %p1191_p3 }
  0x11   :  { %1201 = shalt.err (!%p1198_p7)
}
  0x12   :  { %s1299_s11 = smov 256   ;;  %s1300_s12 = smov 16  }
  0x13   :  { %39 = dma.hbm_to_vmem [thread:$0]  %s1448_s1, 512, %s34_s25, [#allocation6], %s1299_s11, %s1299_s11, %s1300_s12  }
  0x14   :  { %s1301_s15 = smov [#allocation2]   ;;  %s1202_s19 = scalar_lea.hbm %s1447_s0, 128 }
  0x15   :  { %s21_s16 = sshll.u32 %s1301_s15, 4  ;;  %p1203_p8 = scmp.ne.s32.totalorder %s1447_s0, %s1202_s19  ;;  %s22_s16 = int_to_ptr.vmem [resolvable:$true] %s21_s16 }
  0x16   :  { %p1206_p9 = scmp.lt.u32.totalorder %s1202_s19, %s1447_s0 }
  0x18   :  { %p1208_p10 = pnand %p1206_p9, %p1203_p8 }
  0x1a   :  { %1211 = shalt.err (!%p1208_p10)
}
  0x1b   :  { %s1212_s24 = scalar_lea.vmem %s22_s16, 128  ;;  %p1217_p12 = scmp.lt.s32.totalorder %s22_s16, %s22_s16 }
  0x1c   :  { %p1213_p11 = scmp.ne.s32.totalorder %s22_s16, %s1212_s24  ;;  %p1218_p13 = scmp.lt.s32.totalorder %s1212_s24, %s1212_s24 }
  0x1e   :  { %p1219_p0 = por %p1218_p13, %p1217_p12 }
  0x20   :  { %p1220_p1 = pnand %p1219_p0, %p1213_p11 }
  0x22   :  { %1223 = shalt.err (!%p1220_p1)
}
  0x23   :  { %s1302_s1 = smov 64   ;;  %s1303_s25 = smov 4  }
  0x24   :  { %27 = dma.hbm_to_vmem [thread:$0]  %s1447_s0, 128, %s22_s16, [#allocation3], %s1302_s1, %s1302_s1, %s1303_s25  }
  0x25   :  { %s1304_s28 = smov [#allocation7]   ;;  %s1224_s9 = scalar_lea.hbm %s1450_s3, 8192 }
  0x26   :  { %s47_s29 = sshll.u32 %s1304_s28, 4  ;;  %p1225_p2 = scmp.ne.s32.totalorder %s1450_s3, %s1224_s9  ;;  %s48_s29 = int_to_ptr.vmem [resolvable:$true] %s47_s29 }
  0x27   :  { %p1228_p3 = scmp.lt.u32.totalorder %s1224_s9, %s1450_s3 }
  0x29   :  { %p1230_p4 = pnand %p1228_p3, %p1225_p2 }
  0x2b   :  { %1233 = shalt.err (!%p1230_p4)
}
  0x2c   :  { %s1234_s14 = scalar_lea.vmem %s48_s29, 8192  ;;  %p1239_p6 = scmp.lt.s32.totalorder %s48_s29, %s48_s29 }
  0x2d   :  { %p1235_p5 = scmp.ne.s32.totalorder %s48_s29, %s1234_s14  ;;  %p1240_p7 = scmp.lt.s32.totalorder %s1234_s14, %s1234_s14 }
  0x2f   :  { %p1241_p8 = por %p1240_p7, %p1239_p6 }
  0x31   :  { %p1242_p9 = pnand %p1241_p8, %p1235_p5 }
  0x33   :  { %1245 = shalt.err (!%p1242_p9)
}
  0x34   :  { %s1305_s0 = smov 128   ;;  %s1306_s15 = smov 8  }
  0x35   :  { %53 = dma.hbm_to_vmem [thread:$0]  %s1450_s3, 8192, %s48_s29, [#allocation6], %s1305_s0, %s1305_s0, %s1306_s15  }
  0x36   :  { %s1307_s18 = smov [#allocation8]   ;;  %s1246_s22 = scalar_lea.hbm %s1452_s5, 2048 }
  0x37   :  { %s61_s19 = sshll.u32 %s1307_s18, 4  ;;  %p1247_p10 = scmp.ne.s32.totalorder %s1452_s5, %s1246_s22  ;;  %s62_s19 = int_to_ptr.vmem [resolvable:$true] %s61_s19 }
  0x38   :  { %p1250_p11 = scmp.lt.u32.totalorder %s1246_s22, %s1452_s5 }
  0x3a   :  { %p1252_p12 = pnand %p1250_p11, %p1247_p10 }
  0x3c   :  { %1255 = shalt.err (!%p1252_p12)
}
  0x3d   :  { %s1256_s28 = scalar_lea.vmem %s62_s19, 2048  ;;  %p1261_p0 = scmp.lt.s32.totalorder %s62_s19, %s62_s19 }
  0x3e   :  { %p1257_p13 = scmp.ne.s32.totalorder %s62_s19, %s1256_s28  ;;  %p1262_p1 = scmp.lt.s32.totalorder %s1256_s28, %s1256_s28 }
  0x40   :  { %p1263_p2 = por %p1262_p1, %p1261_p0 }
  0x42   :  { %p1264_p3 = pnand %p1263_p2, %p1257_p13 }
  0x44   :  { %1267 = shalt.err (!%p1264_p3)
}
  0x45   :  { %67 = dma.hbm_to_vmem [thread:$0]  %s1452_s5, 2048, %s62_s19, [#allocation9], %s1302_s1, %s1302_s1, %s1303_s25  }
  0x46   :  { %1290 = dma.done.wait [#allocation3], 128  }
  0x47   :  { %1291 = vsyncadd [#allocation3], 4294967168 }
  0x48   :  { %1292 = dma.done.wait [#allocation6], 8704  }
  0x49   :  { %1293 = vsyncadd [#allocation6], 4294958592 }
  0x4a   :  { %1294 = dma.done.wait [#allocation9], 2048  }
  0x4b   :  { %1295 = vsyncadd [#allocation9], 4294965248  ;;  %v1308_v0 = vmov 0   ;;  %v1057_v1 = vld [vmem:[#allocation5 + $0x4] ss:$16 sps:$4 sm:$0xff]   ;;  %v1060_v3 = vld [vmem:[#allocation2] sm:$0xff]  }
  0x4c   :  { %172 = vmatprep.mubr.bf16.mxu0 %v1308_v0  ;;  %v1059_v2 = vld [vmem:[#allocation5] ss:$16 sps:$4 sm:$0xff]   ;;  %140 = vmatprep.subr.bf16.mxu0 %v1057_v1  ;;  %vm136_vm0 = vcmask 130048   ;;  %v1061_v4 = vld [vmem:[#allocation5 + $0x8] ss:$16 sps:$4 sm:$0xff]   ;;  %s1309_s8 = smov [#allocation10]  }
  0x4d   :  { %141 = vmatpush1.bf16.msra.mxu0 %v1059_v2  ;;  %v1063_v5 = vld [vmem:[#allocation5 + $0xc] ss:$16 sps:$4 sm:$0xff]   ;;  %v1066_v7 = vld [vmem:[#allocation7] ss:$8 sps:$4 sm:$0xff]   ;;  %v1069_v9 = vld [vmem:[#allocation7 + $0x10] ss:$8 sps:$4 sm:$0xff]  }
  0x4e   :  { %v1064_v6 = vld [vmem:[#allocation7 + $0x4] ss:$8 sps:$4 sm:$0xff]   ;;  %183 = vmatprep.subr.bf16.mxu0 %v1063_v5  ;;  %v1067_v8 = vld [vmem:[#allocation7 + $0x14] ss:$8 sps:$4 sm:$0xff]   ;;  %v1072_v12 = vld [vmem:[#allocation7 + $0x100] ss:$8 sps:$4 sm:$0xff]  }
  0x4f   :  { %634 = vmatprep.subr.bf16.mxu1 %v1064_v6  ;;  %v1074_v10 = vld [vmem:[#allocation7 + $0x104] ss:$8 sps:$4 sm:$0xff]   ;;  %v1075_v13 = vld [vmem:[#allocation7 + $0x20] ss:$8 sps:$4 sm:$0xff]   ;;  %v1080_v14 = vld [vmem:[#allocation7 + $0x114] ss:$8 sps:$4 sm:$0xff]  }
  0x50   :  { %932 = vmatmul.mubr.msk.bf16.vlgmr.msra.gmra.mrb[0].mxu0 %vm136_vm0, %v1060_v3  ;;  %635 = vmatpush1.bf16.msra.mxu1 %v1066_v7  ;;  %v1070_v11 = vld [vmem:[#allocation7 + $0x24] ss:$8 sps:$4 sm:$0xff]   ;;  %v1076_v15 = vld [vmem:[#allocation7 + $0x34] ss:$8 sps:$4 sm:$0xff]   ;;  %v1078_v16 = vld [vmem:[#allocation7 + $0x110] ss:$8 sps:$4 sm:$0xff]   ;;  %v91_v7 = vlaneseq }
  0x51   :  { %184 = vmatpush1.bf16.msra.mxu0 %v1061_v4  ;;  %215 = vmatprep.mubr.bf16.mxu0 %v1308_v0  ;;  %v1081_v17 = vld [vmem:[#allocation7 + $0x30] ss:$8 sps:$4 sm:$0xff]   ;;  %v1086_v18 = vld [vmem:[#allocation7 + $0x124] ss:$8 sps:$4 sm:$0xff]   ;;  %v1084_v20 = vld [vmem:[#allocation7 + $0x120] ss:$8 sps:$4 sm:$0xff]  }
  0x52   :  { %636 = vmatprep.subr.bf16.mxu1 %v1067_v8  ;;  %677 = vmatprep.subr.bf16.mxu0 %v1074_v10  ;;  %v1082_v19 = vld [vmem:[#allocation7 + $0x44] ss:$8 sps:$4 sm:$0xff]   ;;  %v1087_v21 = vld [vmem:[#allocation7 + $0x40] ss:$8 sps:$4 sm:$0xff]   ;;  %v1092_v22 = vld [vmem:[#allocation7 + $0x134] ss:$8 sps:$4 sm:$0xff]  }
  0x53   :  { %v1088_v23 = vld [vmem:[#allocation7 + $0x54] ss:$8 sps:$4 sm:$0xff]   ;;  %v1090_v24 = vld [vmem:[#allocation7 + $0x130] ss:$8 sps:$4 sm:$0xff]   ;;  %v1098_v26 = vld [vmem:[#allocation7 + $0x144] ss:$8 sps:$4 sm:$0xff]  }
  0x54   :  { %637 = vmatpush1.bf16.msra.mxu1 %v1069_v9  ;;  %v1093_v25 = vld [vmem:[#allocation7 + $0x50] ss:$8 sps:$4 sm:$0xff]   ;;  %v1094_v27 = vld [vmem:[#allocation7 + $0x64] ss:$8 sps:$4 sm:$0xff]   ;;  %v1096_v28 = vld [vmem:[#allocation7 + $0x140] ss:$8 sps:$4 sm:$0xff]  }
  0x55   :  { %638 = vmatprep.subr.bf16.mxu1 %v1070_v11  ;;  %v1099_v29 = vld [vmem:[#allocation7 + $0x60] ss:$8 sps:$4 sm:$0xff]   ;;  %v1104_v30 = vld [vmem:[#allocation7 + $0x154] ss:$8 sps:$4 sm:$0xff]   ;;  %v1102_v32 = vld [vmem:[#allocation7 + $0x150] ss:$8 sps:$4 sm:$0xff]  }
  0x56   :  { %v1100_v31 = vld [vmem:[#allocation7 + $0x74] ss:$8 sps:$4 sm:$0xff]   ;;  %v1105_v33 = vld [vmem:[#allocation7 + $0x70] ss:$8 sps:$4 sm:$0xff]   ;;  %v1110_v34 = vld [vmem:[#allocation7 + $0x164] ss:$8 sps:$4 sm:$0xff]  }
  0x57   :  { %v1106_v35 = vld [vmem:[#allocation7 + $0x84] ss:$8 sps:$4 sm:$0xff]   ;;  %v1108_v36 = vld [vmem:[#allocation7 + $0x160] ss:$8 sps:$4 sm:$0xff]   ;;  %v1116_v38 = vld [vmem:[#allocation7 + $0x174] ss:$8 sps:$4 sm:$0xff]  }
  0x58   :  { %933 = vmatmul.mubr.msk.bf16.vlgmr.msra.gmra.mrb[4].mxu0 %vm136_vm0, %v1060_v3  ;;  %639 = vmatpush1.bf16.msra.mxu1 %v1075_v13  ;;  %v1111_v37 = vld [vmem:[#allocation7 + $0x80] ss:$8 sps:$4 sm:$0xff]   ;;  %v1112_v39 = vld [vmem:[#allocation7 + $0x94] ss:$8 sps:$4 sm:$0xff]   ;;  %v1114_v40 = vld [vmem:[#allocation7 + $0x170] ss:$8 sps:$4 sm:$0xff]  }
  0x59   :  { %678 = vmatpush1.bf16.msra.mxu0 %v1072_v12  ;;  %640 = vmatprep.subr.bf16.mxu1 %v1076_v15  ;;  %v1117_v41 = vld [vmem:[#allocation7 + $0x90] ss:$8 sps:$4 sm:$0xff]   ;;  %v1122_v42 = vld [vmem:[#allocation7 + $0x184] ss:$8 sps:$4 sm:$0xff]   ;;  %v1120_v44 = vld [vmem:[#allocation7 + $0x180] ss:$8 sps:$4 sm:$0xff]  }
  0x5a   :  { %679 = vmatprep.subr.bf16.mxu0 %v1080_v14  ;;  %v1118_v43 = vld [vmem:[#allocation7 + $0xa4] ss:$8 sps:$4 sm:$0xff]   ;;  %v1123_v45 = vld [vmem:[#allocation7 + $0xa0] ss:$8 sps:$4 sm:$0xff]   ;;  %v1128_v46 = vld [vmem:[#allocation7 + $0x194] ss:$8 sps:$4 sm:$0xff]  }
  0x5b   :  { %v1124_v47 = vld [vmem:[#allocation7 + $0xb4] ss:$8 sps:$4 sm:$0xff]   ;;  %v1126_v48 = vld [vmem:[#allocation7 + $0x190] ss:$8 sps:$4 sm:$0xff]   ;;  %v1134_v50 = vld [vmem:[#allocation7 + $0x1a4] ss:$8 sps:$4 sm:$0xff]  }
  0x5c   :  { %641 = vmatpush1.bf16.msra.mxu1 %v1081_v17  ;;  %v1129_v49 = vld [vmem:[#allocation7 + $0xb0] ss:$8 sps:$4 sm:$0xff]   ;;  %v1130_v51 = vld [vmem:[#allocation7 + $0xc4] ss:$8 sps:$4 sm:$0xff]   ;;  %v1132_v52 = vld [vmem:[#allocation7 + $0x1a0] ss:$8 sps:$4 sm:$0xff]  }
  0x5d   :  { %680 = vmatpush1.bf16.msra.mxu0 %v1078_v16  ;;  %642 = vmatprep.subr.bf16.mxu1 %v1082_v19  ;;  %v1135_v53 = vld [vmem:[#allocation7 + $0xc0] ss:$8 sps:$4 sm:$0xff]   ;;  %v1140_v54 = vld [vmem:[#allocation7 + $0x1b4] ss:$8 sps:$4 sm:$0xff]   ;;  %v1138_v56 = vld [vmem:[#allocation7 + $0x1b0] ss:$8 sps:$4 sm:$0xff]  }
  0x5e   :  { %681 = vmatprep.subr.bf16.mxu0 %v1086_v18  ;;  %v1136_v55 = vld [vmem:[#allocation7 + $0xd4] ss:$8 sps:$4 sm:$0xff]   ;;  %v1141_v57 = vld [vmem:[#allocation7 + $0xd0] ss:$8 sps:$4 sm:$0xff]   ;;  %v1142_v58 = vld [vmem:[#allocation7 + $0xe4] ss:$8 sps:$4 sm:$0xff]  }
  0x5f   :  { %v1146_v59 = vld [vmem:[#allocation7 + $0x1c4] ss:$8 sps:$4 sm:$0xff]   ;;  %v1144_v60 = vld [vmem:[#allocation7 + $0x1c0] ss:$8 sps:$4 sm:$0xff]   ;;  %v1148_v62 = vld [vmem:[#allocation7 + $0xf4] ss:$8 sps:$4 sm:$0xff]  }
  0x60   :  { %643 = vmatpush1.bf16.msra.mxu1 %v1087_v21  ;;  %v1147_v61 = vld [vmem:[#allocation7 + $0xe0] ss:$8 sps:$4 sm:$0xff]   ;;  %v1152_v63 = vld [vmem:[#allocation7 + $0x1d4] ss:$8 sps:$4 sm:$0xff]   ;;  %v1150_v0 = vld [vmem:[#allocation7 + $0x1d0] ss:$8 sps:$4 sm:$0xff]  }
  0x61   :  { %682 = vmatpush1.bf16.msra.mxu0 %v1084_v20  ;;  %644 = vmatprep.subr.bf16.mxu1 %v1088_v23  ;;  %v1153_v1 = vld [vmem:[#allocation7 + $0xf0] ss:$8 sps:$4 sm:$0xff]   ;;  %v1156_v2 = vld [vmem:[#allocation7 + $0x1e4] ss:$8 sps:$4 sm:$0xff]   ;;  %v1154_v3 = vld [vmem:[#allocation7 + $0x1e0] ss:$8 sps:$4 sm:$0xff]  }
  0x62   :  { %683 = vmatprep.subr.bf16.mxu0 %v1092_v22  ;;  %v1159_v4 = vld [vmem:[#allocation7 + $0x1f4] ss:$8 sps:$4 sm:$0xff]   ;;  %v1157_v5 = vld [vmem:[#allocation7 + $0x1f0] ss:$8 sps:$4 sm:$0xff]   ;;  %v1160_v6 = vld [vmem:[#allocation8 + $0x40] sm:$0xff]   ;;  %v1409_v8 = vshrl.u32 %v91_v7, 7 }
  0x63   :  { %v89_v10 = vld [vmem:[%s1449_s2] sm:$0xf]  ;;  %s913_s9 = sshll.u32 %s1309_s8, 4  ;;  %s914_s9 = int_to_ptr.vmem [resolvable:$true] %s913_s9 }
  0x64   :  { %645 = vmatpush1.bf16.msra.mxu1 %v1093_v25  ;;  %v93_v9 = vsub.s32 0, %v1409_v8  ;;  %v97_v11 = vsub.s32 1, %v1409_v8  ;;  %v101_v17 = vsub.s32 2, %v1409_v8  ;;  %v105_v20 = vsub.s32 3, %v1409_v8  ;;  %s1268_s10 = scalar_lea.vmem %s914_s9, 256  ;;  %p1273_p5 = scmp.lt.s32.totalorder %s914_s9, %s914_s9 }
  0x65   :  { %684 = vmatpush1.bf16.msra.mxu0 %v1090_v24  ;;  %646 = vmatprep.subr.bf16.mxu1 %v1094_v27  ;;  %p1269_p4 = scmp.ne.s32.totalorder %s914_s9, %s1268_s10  ;;  %p1274_p6 = scmp.lt.s32.totalorder %s1268_s10, %s1268_s10 }
  0x66   :  { %685 = vmatprep.subr.bf16.mxu0 %v1098_v26  ;;  %v94_v12 = vrot.slane %v89_v10, %v93_v9  ;;  %v98_v13 = vrot.slane %v89_v10, %v97_v11  ;;  %v102_v26 = vrot.slane %v89_v10, %v101_v17 }
  0x67   :  { %p1275_p7 = por %p1274_p6, %p1273_p5 }
  0x68   :  { %647 = vmatpush1.bf16.msra.mxu1 %v1099_v29  ;;  %v106_v29 = vrot.slane %v89_v10, %v105_v20 }
  0x69   :  { %686 = vmatpush1.bf16.msra.mxu0 %v1096_v28  ;;  %648 = vmatprep.subr.bf16.mxu1 %v1100_v31  ;;  %p1276_p8 = pnand %p1275_p7, %p1269_p4 }
  0x6a   :  { %687 = vmatprep.subr.bf16.mxu0 %v1104_v30 }
  0x6c   :  { %649 = vmatpush1.bf16.msra.mxu1 %v1105_v33  ;;  %v1161_v33 = vld [vmem:[#allocation8] sm:$0xff]  }
  0x6d   :  { %688 = vmatpush1.bf16.msra.mxu0 %v1102_v32  ;;  %650 = vmatprep.subr.bf16.mxu1 %v1106_v35 }
  0x6e   :  { %689 = vmatprep.subr.bf16.mxu0 %v1110_v34 }
  0x70   :  { %651 = vmatpush1.bf16.msra.mxu1 %v1111_v37 }
  0x71   :  { %690 = vmatpush1.bf16.msra.mxu0 %v1108_v36  ;;  %652 = vmatprep.subr.bf16.mxu1 %v1112_v39  ;;  %v1162_v36 = vld [vmem:[#allocation8 + $0x48] sm:$0xff]  }
  0x72   :  { %691 = vmatprep.subr.bf16.mxu0 %v1116_v38 }
  0x74   :  { %653 = vmatpush1.bf16.msra.mxu1 %v1117_v41 }
  0x75   :  { %692 = vmatpush1.bf16.msra.mxu0 %v1114_v40  ;;  %654 = vmatprep.subr.bf16.mxu1 %v1118_v43 }
  0x76   :  { %693 = vmatprep.subr.bf16.mxu0 %v1122_v42  ;;  %v1163_v42 = vld [vmem:[#allocation8 + $0x8] sm:$0xff]  }
  0x78   :  { %655 = vmatpush1.bf16.msra.mxu1 %v1123_v45  ;;  %v1164_v45 = vld [vmem:[#allocation8 + $0x50] sm:$0xff]  }
  0x79   :  { %694 = vmatpush1.bf16.msra.mxu0 %v1120_v44  ;;  %656 = vmatprep.subr.bf16.mxu1 %v1124_v47 }
  0x7a   :  { %695 = vmatprep.subr.bf16.mxu0 %v1128_v46 }
  0x7c   :  { %657 = vmatpush1.bf16.msra.mxu1 %v1129_v49 }
  0x7d   :  { %696 = vmatpush1.bf16.msra.mxu0 %v1126_v48  ;;  %658 = vmatprep.subr.bf16.mxu1 %v1130_v51  ;;  %v1166_v51 = vld [vmem:[#allocation8 + $0x58] sm:$0xff]  }
  0x7e   :  { %697 = vmatprep.subr.bf16.mxu0 %v1134_v50  ;;  %v1165_v50 = vld [vmem:[#allocation8 + $0x10] sm:$0xff]  }
  0x80   :  { %659 = vmatpush1.bf16.msra.mxu1 %v1135_v53  ;;  %v1168_v53 = vld [vmem:[#allocation8 + $0x60] sm:$0xff]  }
  0x81   :  { %698 = vmatpush1.bf16.msra.mxu0 %v1132_v52  ;;  %660 = vmatprep.subr.bf16.mxu1 %v1136_v55  ;;  %v1167_v52 = vld [vmem:[#allocation8 + $0x18] sm:$0xff]   ;;  %v1170_v55 = vld [vmem:[#allocation8 + $0x68] sm:$0xff]  }
  0x82   :  { %699 = vmatprep.subr.bf16.mxu0 %v1140_v54  ;;  %v1169_v54 = vld [vmem:[#allocation8 + $0x20] sm:$0xff]  }
  0x84   :  { %661 = vmatpush1.bf16.msra.mxu1 %v1141_v57  ;;  %v1172_v57 = vld [vmem:[#allocation8 + $0x70] sm:$0xff]  }
  0x85   :  { %700 = vmatpush1.bf16.msra.mxu0 %v1138_v56  ;;  %662 = vmatprep.subr.bf16.mxu1 %v1142_v58  ;;  %v1171_v56 = vld [vmem:[#allocation8 + $0x28] sm:$0xff]   ;;  %v1173_v58 = vld [vmem:[#allocation8 + $0x30] sm:$0xff]  }
  0x86   :  { %701 = vmatprep.subr.bf16.mxu0 %v1146_v59  ;;  %v1174_v59 = vld [vmem:[#allocation8 + $0x78] sm:$0xff]  }
  0x88   :  { %663 = vmatpush1.bf16.msra.mxu1 %v1147_v61  ;;  %v302_v61 = vld [vmem:[%s1451_s4] sm:$0x3] }
  0x89   :  { %702 = vmatpush1.bf16.msra.mxu0 %v1144_v60  ;;  %664 = vmatprep.subr.bf16.mxu1 %v1148_v62  ;;  %v1175_v60 = vld [vmem:[#allocation8 + $0x38] sm:$0xff]  }
  0x8a   :  { %703 = vmatprep.subr.bf16.mxu0 %v1152_v63 }
  0x8c   :  { %665 = vmatpush1.bf16.msra.mxu1 %v1153_v1  ;;  %v307_v1 = vrot.slane %v302_v61, %v93_v9 }
  0x8d   :  { %704 = vmatpush1.bf16.msra.mxu0 %v1150_v0  ;;  %1015 = vmatprep.subr.bf16.mxu1 %v1160_v6 }
  0x8e   :  { %705 = vmatprep.subr.bf16.mxu0 %v1156_v2 }
  0x91   :  { %706 = vmatpush1.bf16.msra.mxu0 %v1154_v3  ;;  %v311_v3 = vrot.slane %v302_v61, %v97_v11  ;;  %v998_v11 = vld [vmem:[%s1453_s6] ss:$0 sm:$0xff] }
  0x92   :  { %707 = vmatprep.subr.bf16.mxu0 %v1159_v4 }
  0x95   :  { %708 = vmatpush1.bf16.msra.mxu0 %v1157_v5 }
 0x123   :  { %v174_v14 = vpop.f32.mrb[0].mxu0 }
 0x124   :  { %v175_v15 = vadd.f32 %v174_v14, %v94_v12  ;;  %v176_v16 = vpop.f32.mrb[1].mxu0 }
 0x125   :  { %v177_v18 = vadd.f32 %v176_v16, %v98_v13  ;;  %v178_v19 = vpop.f32.mrb[2].mxu0 }
 0x126   :  { %v179_v21 = vadd.f32 %v178_v19, %v94_v12  ;;  %v180_v22 = vpop.f32.mrb[3].mxu0  ;;  %v226_v24 = vmax.f32 %v175_v15, 0.0 }
 0x127   :  { %v181_v23 = vadd.f32 %v180_v22, %v98_v13  ;;  %v227_v27 = vmax.f32 %v177_v18, 0.0 }
 0x128   :  { %v230_v25 = vmax.f32 %v179_v21, 0.0 }
 0x129   :  { %v231_v28 = vmax.f32 %v181_v23, 0.0 }
 0x12a   :  { %v234_v30 = vpack.c.bf16 %v230_v25, %v226_v24 }
 0x12b   :  { %v217_v31 = vpop.f32.mrb[4].mxu0  ;;  %v235_v32 = vpack.c.bf16 %v231_v28, %v227_v27 }
 0x12c   :  { %v218_v34 = vadd.f32 %v217_v31, %v102_v26  ;;  %v219_v35 = vpop.f32.mrb[5].mxu0 }
 0x12d   :  { %v220_v37 = vadd.f32 %v219_v35, %v106_v29  ;;  %v221_v38 = vpop.f32.mrb[6].mxu0  ;;  %666 = vmatprep.mubr.bf16.mxu1 %v235_v32 }
 0x12e   :  { %v222_v39 = vadd.f32 %v221_v38, %v102_v26  ;;  %v223_v40 = vpop.f32.mrb[7].mxu0  ;;  %667 = vmatmul.mubr.bf16.vlgmr.msra.gmra.mrb[0].mxu1 %v234_v30  ;;  %v228_v43 = vmax.f32 %v218_v34, 0.0 }
 0x12f   :  { %v224_v41 = vadd.f32 %v223_v40, %v106_v29  ;;  %1016 = vmatpush3.bf16.msra.mxu1 %v1161_v33  ;;  %v229_v46 = vmax.f32 %v220_v37, 0.0 }
 0x130   :  { %v232_v44 = vmax.f32 %v222_v39, 0.0  ;;  %1017 = vmatprep.subr.bf16.mxu1 %v1162_v36 }
 0x131   :  { %v233_v47 = vmax.f32 %v224_v41, 0.0 }
 0x132   :  { %v236_v48 = vpack.c.bf16 %v232_v44, %v228_v43 }
 0x133   :  { %v237_v49 = vpack.c.bf16 %v233_v47, %v229_v46  ;;  %1018 = vmatpush3.bf16.msra.mxu1 %v1163_v42 }
 0x134   :  { %1019 = vmatprep.subr.bf16.mxu1 %v1164_v45 }
 0x135   :  { %709 = vmatprep.mubr.bf16.mxu0 %v237_v49 }
 0x136   :  { %710 = vmatmul.mubr.bf16.vlgmr.msra.gmra.mrb[8].mxu0 %v236_v48 }
 0x137   :  { %1020 = vmatpush3.bf16.msra.mxu1 %v1165_v50 }
 0x138   :  { %1021 = vmatprep.subr.bf16.mxu1 %v1166_v51 }
 0x13b   :  { %1022 = vmatpush3.bf16.msra.mxu1 %v1167_v52 }
 0x13c   :  { %1023 = vmatprep.subr.bf16.mxu1 %v1168_v53 }
 0x13f   :  { %1024 = vmatpush3.bf16.msra.mxu1 %v1169_v54 }
 0x140   :  { %1025 = vmatprep.subr.bf16.mxu1 %v1170_v55 }
 0x143   :  { %1026 = vmatpush3.bf16.msra.mxu1 %v1171_v56 }
 0x144   :  { %1027 = vmatprep.subr.bf16.mxu1 %v1172_v57 }
 0x147   :  { %1028 = vmatpush3.bf16.msra.mxu1 %v1173_v58 }
 0x148   :  { %1029 = vmatprep.subr.bf16.mxu1 %v1174_v59 }
 0x14b   :  { %1030 = vmatpush3.bf16.msra.mxu1 %v1175_v60 }
 0x201   :  { %v668_v62 = vpop.f32.mrb[0].mxu1 }
 0x202   :  { %v670_v63 = vpop.f32.mrb[1].mxu1  ;;  %v669_v4 = vadd.f32 %v668_v62, %v307_v1 }
 0x203   :  { %v672_v0 = vpop.f32.mrb[2].mxu1  ;;  %v671_v5 = vadd.f32 %v670_v63, %v311_v3 }
 0x204   :  { %v674_v2 = vpop.f32.mrb[3].mxu1  ;;  %v673_v7 = vadd.f32 %v672_v0, %v307_v1 }
 0x205   :  { %v675_v13 = vadd.f32 %v674_v2, %v311_v3 }
 0x209   :  { %v711_v6 = vpop.f32.mrb[8].mxu0 }
 0x20a   :  { %v712_v10 = vadd.f32 %v711_v6, %v669_v4  ;;  %v713_v12 = vpop.f32.mrb[9].mxu0 }
 0x20b   :  { %v714_v14 = vadd.f32 %v713_v12, %v671_v5  ;;  %v715_v15 = vpop.f32.mrb[10].mxu0 }
 0x20c   :  { %v716_v16 = vadd.f32 %v715_v15, %v673_v7  ;;  %v717_v17 = vpop.f32.mrb[11].mxu0  ;;  %v720_v19 = vmax.f32 %v712_v10, 0.0 }
 0x20d   :  { %v718_v18 = vadd.f32 %v717_v17, %v675_v13  ;;  %v721_v21 = vmax.f32 %v714_v14, 0.0 }
 0x20e   :  { %v722_v20 = vmax.f32 %v716_v16, 0.0 }
 0x20f   :  { %v723_v9 = vmax.f32 %v718_v18, 0.0 }
 0x210   :  { %v724_v22 = vpack.c.bf16 %v722_v20, %v720_v19 }
 0x211   :  { %v725_v23 = vpack.c.bf16 %v723_v9, %v721_v21 }
 0x213   :  { %893 = vmatprep.mubr.bf16.mxu1 %v725_v23 }
 0x214   :  { %894 = vmatmul.mubr.bf16.vlgmr.msra.gmra.mrb[4].mxu1 %v724_v22 }
 0x2e7   :  { %v1031_v8 = vpop.f32.mrb[4].mxu1 }
 0x2e8   :  { %v1032_v24 = vpop.f32.mrb[5].mxu1 }
 0x2e9   :  { %v1033_v25 = vadd.f32 %v1032_v24, %v1031_v8  ;;  %v1034_v26 = vpop.f32.mrb[6].mxu1 }
 0x2ea   :  { %v1035_v27 = vpop.f32.mrb[7].mxu1 }
 0x2eb   :  { %v896_v28 = vadd.f32 %v1033_v25, %v998_v11  ;;  %v1036_v29 = vadd.f32 %v1035_v27, %v1034_v26 }
 0x2ed   :  { %1176 = vtanh.f32 %v896_v28  ;;  %v899_v30 = vadd.f32 %v1036_v29, %v998_v11 }
 0x2ef   :  { %1178 = vtanh.f32 %v899_v30 }
 0x2f7   :  { %v1177_v31 = vpop.eup %1176 }
 0x2f8   :  { %v904_v32 = vmul.f32 2.0, %v1177_v31 }
 0x2f9   :  { %v1179_v33 = vpop.eup %1178 }
 0x2fa   :  { %v905_v34 = vmul.f32 2.0, %v1179_v33  ;;  %906 = vst [vmem:[#allocation10] sm:$0xff] %v904_v32 }
 0x2fc   :  { %907 = vst [vmem:[#allocation10 + $0x8] sm:$0xff] %v905_v34 }
 0x2fd   :  { %1279 = shalt.err (!%p1276_p8)
}
 0x2fe   :  { %s1280_s12 = scalar_lea.hbm %s1454_s7, 256 }
 0x2ff   :  { %p1281_p9 = scmp.ne.s32.totalorder %s1454_s7, %s1280_s12  ;;  %p1284_p10 = scmp.lt.u32.totalorder %s1280_s12, %s1454_s7 }
 0x301   :  { %p1286_p11 = pnand %p1284_p10, %p1281_p9 }
 0x303   :  { %1289 = shalt.err (!%p1286_p11)
}
 0x304   :  { %919 = dma.vmem_to_hbm [thread:$0]  %s914_s9, 256, %s1454_s7, [#allocation4], %s1305_s0, %s1305_s0, %s1306_s15  }
 0x305   :  { %1296 = dma.done.wait [#allocation4], 256  }
 0x306   :  { %1297 = vsyncadd [#allocation4], 4294967040 }
 0x307   :  { %923 = vsyncpa [#allocation3], 1 }
 0x308   :  { %924 = vsyncpa [#allocation6], 1 }
 0x309   :  { %925 = vsyncpa [#allocation9], 1 }
 0x30a   :  { %926 = vsyncpa [#allocation4], 1 }

</bundles_post_ra>
